<compile_context>
chip_gen: v7x
topology: tpu7x:2x2x1
jax: 0.10.0
libtpu: 0.0.40
codegen_flags: <defaults>
</compile_context>

<pallas_src>
import jax
import jax.numpy as jnp
from jax.experimental import pallas as pl
from jax.experimental.pallas import tpu as pltpu

_MIB = 1024 * 1024


def _round_up(x, m):
    return ((x + m - 1) // m) * m


def _vmem_capacity_bytes():
    try:
        info = pltpu.get_tpu_info()
        cap = getattr(info, "vmem_capacity_bytes", None)
        if cap:
            return int(cap)
    except Exception:
        pass
    return 64 * _MIB  # conservative default (v7x per-TensorCore VMEM)


def _tile_vmem_bytes(tm, tf, H, in_itemsize, out_itemsize):
    """Double-buffered in/out tiles + f32 accumulator scratch."""
    return (2 * tm * H * in_itemsize          # x tile (double buffered)
            + 2 * 2 * tf * H * in_itemsize    # w1t + w2 tiles (double buffered)
            + 2 * tm * H * out_itemsize       # output tile (double buffered)
            + tm * H * 4)                     # f32 accumulator scratch


def _select_tiles(E, TPE, F_pad, H, in_itemsize, out_itemsize, budget, tf_align):
    """Roofline / VMEM-budget-aware (tm, tf) selection."""
    tm_align = 16  # bf16 (16, 128) sublane packing of the x tile
    tm = min(_round_up(TPE, tm_align), 1024)
    if E == 1 and tm >= TPE and TPE > tm_align:
        # Don't starve the second TensorCore (v7x megacore) of parallel work.
        tm = _round_up(-(-TPE // 2), tm_align)

    while True:
        # Largest tf that is a multiple of tf_align, divides F_pad, and fits.
        k = F_pad // tf_align
        while k >= 1:
            tf = tf_align * k
            if F_pad % tf == 0 and _tile_vmem_bytes(
                    tm, tf, H, in_itemsize, out_itemsize) <= budget:
                return tm, tf
            k -= 1
        if tm <= tm_align:
            return tm_align, tf_align  # minimal tiles; vmem_limit covers it
        tm = max(tm_align, _round_up(tm // 2, tm_align))


def _sparse_mlp_kernel(x_ref, w1t_ref, w2_ref, o_ref, acc_ref):
    # x_ref  : (tm, H)   token tile of this expert (resident across F steps)
    # w1t_ref: (H,  tf)  pre-transposed first-layer weight slice
    # w2_ref : (tf, H)   second-layer weight slice
    # o_ref  : (tm, H)   output tile (written on the last F step)
    # acc_ref: (tm, H)   f32 VMEM accumulator
    f = pl.program_id(2)

    @pl.when(f == 0)
    def _():
        acc_ref[...] = jnp.zeros_like(acc_ref)

    # First matmul in native MXU (M,K)x(K,N) form -- w1 was transposed once in
    # HBM so no per-step XLU transpose is needed here.
    h = jax.lax.dot_general(
        x_ref[...], w1t_ref[...], (((1,), (0,)), ((), ())),
        preferred_element_type=jnp.float32)
    # megablocks' gelu == tanh approximation; elementwise math stays in f32
    # (also correct on v5e which has no bf16 VPU/EUP path).
    h = jax.nn.gelu(h, approximate=True)

    # Second matmul partial product; keep the += fused with the dot so Mosaic
    # can use the v7x MRB in-place accumulate path.
    acc_ref[...] += jax.lax.dot_general(
        h.astype(w2_ref.dtype), w2_ref[...], (((1,), (0,)), ((), ())),
        preferred_element_type=jnp.float32)

    @pl.when(f == pl.num_programs(2) - 1)
    def _():
        o_ref[...] = acc_ref[...].astype(o_ref.dtype)


def _sparse_mlp_call(x_g, w1t, w2, *, tm, tf, out_dtype, vmem_limit_bytes):
    E, TPE_pad, H = x_g.shape
    _, _, F_pad = w1t.shape
    assert TPE_pad % tm == 0 and F_pad % tf == 0
    grid = (E, TPE_pad // tm, F_pad // tf)
    m_tiles = TPE_pad // tm

    in_itemsize = x_g.dtype.itemsize
    out_itemsize = jnp.dtype(out_dtype).itemsize
    # Weights are re-streamed once per token tile -> count that factor.
    bytes_accessed = (
        x_g.size * in_itemsize
        + (w1t.size + w2.size) * in_itemsize * m_tiles
        + E * TPE_pad * H * out_itemsize)
    cost = pl.CostEstimate(
        flops=4 * E * TPE_pad * F_pad * H,   # two matmuls
        transcendentals=E * TPE_pad * F_pad,  # tanh in gelu
        bytes_accessed=bytes_accessed)

    return pl.pallas_call(
        _sparse_mlp_kernel,
        out_shape=jax.ShapeDtypeStruct((E, TPE_pad, H), out_dtype),
        grid_spec=pltpu.PrefetchScalarGridSpec(
            num_scalar_prefetch=0,
            grid=grid,
            in_specs=[
                # x tile stays resident across the F (reduction) axis.
                pl.BlockSpec((None, tm, H), lambda e, m, f: (e, m, 0)),
                # TODO(synk): in the low-token (HBM-bound) regime, deepen the
                # weight pipelining with pipeline_mode=pl.Buffered(3) and/or
                # use int8/fp8 weights to halve the binding HBM traffic.
                pl.BlockSpec((None, H, tf), lambda e, m, f: (e, 0, f)),
                pl.BlockSpec((None, tf, H), lambda e, m, f: (e, f, 0)),
            ],
            # Same output block across f -> resident accumulator pattern.
            out_specs=pl.BlockSpec((None, tm, H), lambda e, m, f: (e, m, 0)),
            scratch_shapes=[pltpu.VMEM((tm, H), jnp.float32)],
        ),
        compiler_params=pltpu.CompilerParams(
            dimension_semantics=("parallel", "parallel", "arbitrary"),
            vmem_limit_bytes=vmem_limit_bytes,
        ),
        cost_estimate=cost,
    )(x_g, w1t, w2)


def prepare_sparse_mlp_weights(w1_flat, w2_flat, num_experts,
                               *, compute_dtype=jnp.bfloat16):
    """One-time weight preparation (keep the result persistent, do NOT redo
    per forward call): reshape to (E, F, H), cast to the compute dtype,
    zero-pad F to a lane/MXU-friendly multiple and pre-transpose w1 to
    (E, H, F) so the first matmul needs no per-step XLU transpose."""
    total_rows, hidden = w1_flat.shape
    assert total_rows % num_experts == 0
    ffn_hidden = total_rows // num_experts
    assert w2_flat.shape == (total_rows, hidden)

    tf_align = 256 if ffn_hidden >= 256 else 128
    F_pad = _round_up(ffn_hidden, tf_align)

    w1 = w1_flat.reshape(num_experts, ffn_hidden, hidden).astype(compute_dtype)
    w2 = w2_flat.reshape(num_experts, ffn_hidden, hidden).astype(compute_dtype)
    if F_pad != ffn_hidden:
        pad = F_pad - ffn_hidden
        # Zero rows contribute exactly zero to the output (gelu(0) == 0).
        w1 = jnp.pad(w1, ((0, 0), (0, pad), (0, 0)))
        w2 = jnp.pad(w2, ((0, 0), (0, pad), (0, 0)))
    w1t = jnp.transpose(w1, (0, 2, 1))  # (E, H, F_pad)
    return w1t, w2


def sparse_mlp_forward(x, w1t, w2, num_experts, tokens_per_expert,
                       *, tm=None, tf=None):
    """Forward matching SparseMLP.forward on dense, expert-grouped tokens.

    x   : (num_experts * tokens_per_expert, hidden)  tokens grouped by expert
    w1t : (num_experts, hidden, F_pad)   from prepare_sparse_mlp_weights
    w2  : (num_experts, F_pad, hidden)   from prepare_sparse_mlp_weights
    returns : (num_experts * tokens_per_expert, hidden) in x.dtype
    """
    tokens, hidden = x.shape
    E, H, F_pad = w1t.shape
    assert E == num_experts and H == hidden
    assert tokens == num_experts * tokens_per_expert
    assert H % 128 == 0, "hidden_size must be a multiple of 128 (lane-dense)"
    assert w2.shape == (E, F_pad, H)

    compute_dtype = w2.dtype
    in_itemsize = jnp.dtype(compute_dtype).itemsize
    out_dtype = x.dtype
    out_itemsize = jnp.dtype(out_dtype).itemsize

    # Generation-aware VMEM budget (v7x: 64 MiB physical -> ~48 MiB limit;
    # v5e/v6e: 128 MiB -> ~96 MiB limit).
    vmem_cap = _vmem_capacity_bytes()
    vmem_limit = max(32 * _MIB, int(0.75 * vmem_cap))
    tile_budget = int(0.85 * vmem_limit)

    tf_align = 256 if F_pad % 256 == 0 else 128
    if tm is None or tf is None:
        auto_tm, auto_tf = _select_tiles(E, tokens_per_expert, F_pad, H,
                                         in_itemsize, out_itemsize,
                                         tile_budget, tf_align)
        tm = auto_tm if tm is None else tm
        tf = auto_tf if tf is None else tf

    assert tm % 16 == 0, "tm must be a multiple of 16 (bf16 sublane packing)"
    assert tf % 128 == 0 and F_pad % tf == 0, (tf, F_pad)

    # Make sure the scoped-VMEM limit covers the chosen tiles (with headroom),
    # without exceeding the physical capacity.
    needed = _tile_vmem_bytes(tm, tf, H, in_itemsize, out_itemsize)
    vmem_limit = min(max(vmem_limit, needed + 8 * _MIB), vmem_cap)

    # Pad the per-expert token dim to a multiple of tm; pad rows are zero and
    # are sliced off the output.
    TPE_pad = _round_up(tokens_per_expert, tm)
    x_g = x.reshape(E, tokens_per_expert, H).astype(compute_dtype)
    if TPE_pad != tokens_per_expert:
        x_g = jnp.pad(x_g, ((0, 0), (0, TPE_pad - tokens_per_expert), (0, 0)))

    out = _sparse_mlp_call(x_g, w1t, w2, tm=tm, tf=tf,
                           out_dtype=out_dtype, vmem_limit_bytes=vmem_limit)
    if TPE_pad != tokens_per_expert:
        out = out[:, :tokens_per_expert, :]
    return out.reshape(tokens, hidden)


if __name__ == "__main__":
    # Small but representative shapes; deliberately non-aligned TPE / F so the
    # zero-padding paths (token dim and FFN dim) are exercised.
    num_experts = 2
    tokens_per_expert = 24         # not 16-aligned -> token padding path
    hidden_size = 128              # args.hidden_size (multiple of 128)
    ffn_hidden_size = 320          # not 256-aligned -> FFN padding path
    tokens = num_experts * tokens_per_expert

    key = jax.random.PRNGKey(0)
    kx, k1, k2 = jax.random.split(key, 3)

    # Deterministic "init_method" stand-ins (normal init, scaled).
    x = jax.random.normal(kx, (tokens, hidden_size), dtype=jnp.float32)
    w1 = (jax.random.normal(k1, (num_experts * ffn_hidden_size, hidden_size),
                            dtype=jnp.float32) * 0.02)
    w2 = (jax.random.normal(k2, (num_experts * ffn_hidden_size, hidden_size),
                            dtype=jnp.float32) * 0.02)

    # One-time weight preparation (cast / pad / transpose) kept outside the
    # per-call forward path.
    w1t_p, w2_p = prepare_sparse_mlp_weights(w1, w2, num_experts)

    # 1) forced small tiles -> grid (2, 2, 4): exercises both the token-tile
    #    axis and the F accumulation axis.
    out_small = sparse_mlp_forward(x, w1t_p, w2_p, num_experts,
                                   tokens_per_expert, tm=16, tf=128)
    # 2) auto (VMEM / roofline aware) tiles.
    out_auto = sparse_mlp_forward(x, w1t_p, w2_p, num_experts,
                                  tokens_per_expert)
    out_small, out_auto = jax.block_until_ready((out_small, out_auto))

    # Pure-JAX reference replicating the bf16-operand / f32-accumulate path.
    cd = jnp.bfloat16
    xg = x.reshape(num_experts, tokens_per_expert, hidden_size).astype(cd)
    w1g = w1.reshape(num_experts, ffn_hidden_size, hidden_size).astype(cd)
    w2g = w2.reshape(num_experts, ffn_hidden_size, hidden_size).astype(cd)
    h_ref = jnp.einsum("eth,efh->etf", xg, w1g,
                       preferred_element_type=jnp.float32)
    h_ref = jax.nn.gelu(h_ref, approximate=True).astype(cd)
    ref = jnp.einsum("etf,efh->eth", h_ref, w2g,
                     preferred_element_type=jnp.float32)
    ref = ref.reshape(tokens, hidden_size).astype(x.dtype)

    for out in (out_small, out_auto):
        assert out.shape == (tokens, hidden_size)
        err = float(jnp.max(jnp.abs(out - ref)))
        assert jnp.allclose(out, ref, atol=5e-3, rtol=5e-3), err

    # TODO(synk): gradient-scaling / expert- & weight-parallel paths, the
    # memory-optimized autograd and turbo quantization are training-time /
    # distributed features with no single-chip forward-pass effect; not
    # implemented.  Truly ragged (non-padded) megablocks topologies would need
    # scalar-prefetched per-expert group sizes to skip empty tiles.
    print("KERNEL_OK")
</pallas_src>

<mosaic_0001>
module attributes {stable_mosaic.version = 11 : i64} {
  func.func @_sparse_mlp_kernel(%arg0: i32, %arg1: i32, %arg2: i32, %arg3: memref<1x16x128xbf16, #tpu.memory_space<vmem>>, %arg4: memref<1x128x128xbf16, #tpu.memory_space<vmem>>, %arg5: memref<1x128x128xbf16, #tpu.memory_space<vmem>>, %arg6: memref<1x16x128xf32, #tpu.memory_space<vmem>>, %arg7: memref<16x128xf32, #tpu.memory_space<vmem>>) attributes {dimension_semantics = [#tpu.dimension_semantics<parallel>, #tpu.dimension_semantics<parallel>, #tpu.dimension_semantics<arbitrary>], iteration_bounds = array<i64: 2, 2, 4>, scalar_prefetch = 0 : i64, scratch_operands = 1 : i64, tpu.core_type = #tpu.core_type<tc>, window_params = [{transform_indices = @transform_0, window_bounds = array<i64: 1, 16, 128>}, {transform_indices = @transform_1, window_bounds = array<i64: 1, 128, 128>}, {transform_indices = @transform_2, window_bounds = array<i64: 1, 128, 128>}, {transform_indices = @transform_3, window_bounds = array<i64: 1, 16, 128>}]} {
    %c0_i32 = arith.constant 0 : i32
    %0 = arith.cmpi eq, %arg2, %c0_i32 : i32
    %1 = arith.extui %0 : i1 to i32
    %c0_i32_0 = arith.constant 0 : i32
    %2 = arith.cmpi ne, %1, %c0_i32_0 : i32
    scf.if %2 {
      %cst_19 = arith.constant 0.000000e+00 : f32
      %31 = vector.broadcast %cst_19 : f32 to vector<16x128xf32>
      %c0_20 = arith.constant 0 : index
      %c0_21 = arith.constant 0 : index
      %32 = vector.load %arg7[%c0_20, %c0_21] : memref<16x128xf32, #tpu.memory_space<vmem>>, vector<16x128xf32>
      tpu.vector_store %arg7[%c0_20, %c0_21], %31 {strides = array<i32>} : memref<16x128xf32, #tpu.memory_space<vmem>>, vector<16x128xf32>,
    } else {
    }
    %c0 = arith.constant 0 : index
    %c0_1 = arith.constant 0 : index
    %c0_2 = arith.constant 0 : index
    %3 = vector.load %arg3[%c0, %c0_1, %c0_2] : memref<1x16x128xbf16, #tpu.memory_space<vmem>>, vector<1x16x128xbf16>
    %4 = vector.shape_cast %3 : vector<1x16x128xbf16> to vector<16x128xbf16>
    %c0_3 = arith.constant 0 : index
    %c0_4 = arith.constant 0 : index
    %c0_5 = arith.constant 0 : index
    %5 = vector.load %arg4[%c0_3, %c0_4, %c0_5] : memref<1x128x128xbf16, #tpu.memory_space<vmem>>, vector<1x128x128xbf16>
    %6 = vector.shape_cast %5 : vector<1x128x128xbf16> to vector<128x128xbf16>
    %cst = arith.constant dense<0.000000e+00> : vector<16x128xf32>
    %7 = tpu.matmul %4, %6, %cst {dimension_numbers = #tpu.dot_dimension_numbers<[1], [0], [0], [1], [0, 0, 1, 1], [], []>} : vector<16x128xbf16>, vector<128x128xbf16>, vector<16x128xf32> -> vector<16x128xf32>
    %8 = arith.mulf %7, %7 : vector<16x128xf32>
    %9 = arith.mulf %7, %8 : vector<16x128xf32>
    %cst_6 = arith.constant 4.471500e-02 : f32
    %10 = vector.broadcast %cst_6 : f32 to vector<16x128xf32>
    %11 = arith.mulf %10, %9 : vector<16x128xf32>
    %12 = arith.addf %7, %11 : vector<16x128xf32>
    %cst_7 = arith.constant 0.797884583 : f32
    %13 = vector.broadcast %cst_7 : f32 to vector<16x128xf32>
    %14 = arith.mulf %13, %12 : vector<16x128xf32>
    %15 = math.tanh %14 : vector<16x128xf32>
    %cst_8 = arith.constant 1.000000e+00 : f32
    %16 = vector.broadcast %cst_8 : f32 to vector<16x128xf32>
    %17 = arith.addf %16, %15 : vector<16x128xf32>
    %cst_9 = arith.constant 5.000000e-01 : f32
    %18 = vector.broadcast %cst_9 : f32 to vector<16x128xf32>
    %19 = arith.mulf %18, %17 : vector<16x128xf32>
    %20 = arith.mulf %7, %19 : vector<16x128xf32>
    %c0_10 = arith.constant 0 : index
    %c0_11 = arith.constant 0 : index
    %21 = vector.load %arg7[%c0_10, %c0_11] : memref<16x128xf32, #tpu.memory_space<vmem>>, vector<16x128xf32>
    %22 = arith.truncf %20 : vector<16x128xf32> to vector<16x128xbf16>
    %c0_12 = arith.constant 0 : index
    %c0_13 = arith.constant 0 : index
    %c0_14 = arith.constant 0 : index
    %23 = vector.load %arg5[%c0_12, %c0_13, %c0_14] : memref<1x128x128xbf16, #tpu.memory_space<vmem>>, vector<1x128x128xbf16>
    %24 = vector.shape_cast %23 : vector<1x128x128xbf16> to vector<128x128xbf16>
    %cst_15 = arith.constant dense<0.000000e+00> : vector<16x128xf32>
    %25 = tpu.matmul %22, %24, %cst_15 {dimension_numbers = #tpu.dot_dimension_numbers<[1], [0], [0], [1], [0, 0, 1, 1], [], []>} : vector<16x128xbf16>, vector<128x128xbf16>, vector<16x128xf32> -> vector<16x128xf32>
    %26 = arith.addf %21, %25 : vector<16x128xf32>
    %c0_16 = arith.constant 0 : index
    %c0_17 = arith.constant 0 : index
    %27 = vector.load %arg7[%c0_16, %c0_17] : memref<16x128xf32, #tpu.memory_space<vmem>>, vector<16x128xf32>
    tpu.vector_store %arg7[%c0_16, %c0_17], %26 {strides = array<i32>} : memref<16x128xf32, #tpu.memory_space<vmem>>, vector<16x128xf32>,
    %c3_i32 = arith.constant 3 : i32
    %28 = arith.cmpi eq, %arg2, %c3_i32 : i32
    %29 = arith.extui %28 : i1 to i32
    %c0_i32_18 = arith.constant 0 : i32
    %30 = arith.cmpi ne, %29, %c0_i32_18 : i32
    scf.if %30 {
      %c0_19 = arith.constant 0 : index
      %c0_20 = arith.constant 0 : index
      %31 = vector.load %arg7[%c0_19, %c0_20] : memref<16x128xf32, #tpu.memory_space<vmem>>, vector<16x128xf32>
      %c0_21 = arith.constant 0 : index
      %c0_22 = arith.constant 0 : index
      %c0_23 = arith.constant 0 : index
      %32 = vector.load %arg6[%c0_21, %c0_22, %c0_23] : memref<1x16x128xf32, #tpu.memory_space<vmem>>, vector<1x16x128xf32>
      %33 = vector.shape_cast %32 : vector<1x16x128xf32> to vector<16x128xf32>
      %34 = vector.shape_cast %31 : vector<16x128xf32> to vector<1x16x128xf32>
      tpu.vector_store %arg6[%c0_21, %c0_22, %c0_23], %34 {strides = array<i32>} : memref<1x16x128xf32, #tpu.memory_space<vmem>>, vector<1x16x128xf32>,
    } else {
    }
    return
  }
  func.func @transform_0(%arg0: i32, %arg1: i32, %arg2: i32) -> (i32, i32, i32) {
    %c0_i32 = arith.constant 0 : i32
    %c0_i32_0 = arith.constant 0 : i32
    return %arg0, %arg1, %c0_i32 : i32, i32, i32
  }
  func.func @transform_1(%arg0: i32, %arg1: i32, %arg2: i32) -> (i32, i32, i32) {
    %c0_i32 = arith.constant 0 : i32
    %c0_i32_0 = arith.constant 0 : i32
    return %arg0, %c0_i32, %arg2 : i32, i32, i32
  }
  func.func @transform_2(%arg0: i32, %arg1: i32, %arg2: i32) -> (i32, i32, i32) {
    %c0_i32 = arith.constant 0 : i32
    %c0_i32_0 = arith.constant 0 : i32
    return %arg0, %arg2, %c0_i32 : i32, i32, i32
  }
  func.func @transform_3(%arg0: i32, %arg1: i32, %arg2: i32) -> (i32, i32, i32) {
    %c0_i32 = arith.constant 0 : i32
    %c0_i32_0 = arith.constant 0 : i32
    return %arg0, %arg1, %c0_i32 : i32, i32, i32
  }
}

</mosaic_0001>

<bundles_post_ra>
// kernel: tpu_custom_call.1
= control target key start
LH: loop header
LB: loop body
LE: loop exit
PB: predicated region body
PF: predicated region fallthrough
CT: control target
= control target key end

     0   :  { %s1687_s0 = inlined_call_operand.hbm [shape: bf16[2,32,128], index: 0, kind: input, shape index: {}]   ;;  %s1688_s1 = inlined_call_operand.hbm [shape: bf16[2,128,512], index: 1, kind: input, shape index: {}]   ;;  %s1689_s2 = inlined_call_operand.hbm [shape: bf16[2,512,128], index: 2, kind: input, shape index: {}]   ;;  %s1690_s3 = inlined_call_operand.hbm [shape: f32[2,32,128], index: 3, kind: output, shape index: {}]  }
   0x1   :  { %1717 = sst [smem:[#allocation27_spill]] %s1688_s1 }
   0x2   :  { %1718 = sst [smem:[#allocation28_spill]] %s1690_s3 }
   0x3   :  { %8 = vsyncpa [#allocation4], 0 }
   0x4   :  { %10 = vsyncpa [#allocation4 + $0x1], 0 }
   0x5   :  { %11 = vsyncpa [#allocation7], 0 }
   0x6   :  { %13 = vsyncpa [#allocation7 + $0x1], 0 }
   0x7   :  { %14 = vsyncpa [#allocation5], 0 }
   0x8   :  { %16 = vsyncpa [#allocation5 + $0x1], 0  ;;  %s1245_s12 = smov 0   ;;  %s1247_s13 = smov 0  }
   0x9   :  { %s1249_s14 = smov 0   ;;  %s1251_s15 = smov 0  }
   0xa   :  { %s1253_s16 = smov 0   ;;  %s1255_s17 = smov 0  }
   0xb   :  { %s1257_s18 = smov 0   ;;  %s1259_s19 = smov 0  }
   0xc   :  { %s1261_s20 = smov 0   ;;  %s1263_s21 = smov 0  }
   0xd   :  { %s1265_s22 = smov 0   ;;  %s1267_s23 = smov 0  }
   0xe   :  { %s1269_s24 = smov 0  }
   0xf LB: > { %1719 = sst [smem:[#allocation13_spill]] %s1167_s13  ;;  %s34_s25 = sadd.s32 1, %s1199_s21  ;;  %s1211_s24 = sphi %s1269_s24, %s22_s24   ;;  %s1207_s23 = sphi %s1267_s23, %s1791_s23   ;;  %s1203_s22 = sphi %s1265_s22, %s1790_s22   ;;  %s1199_s21 = sphi %s1263_s21, %s1789_s21   ;;  %s1195_s20 = sphi %s1261_s20, %s1788_s20   ;;  %s1191_s19 = sphi %s1259_s19, %s1787_s19   ;;  %s1187_s18 = sphi %s1257_s18, %s1786_s18   ;;  %s1183_s17 = sphi %s1255_s17, %s1785_s17   ;;  %s1179_s16 = sphi %s1253_s16, %s1784_s16   ;;  %s1175_s15 = sphi %s1251_s15, %s1778_s15   ;;  %s1171_s14 = sphi %s1249_s14, %s1783_s14   ;;  %s1167_s13 = sphi %s1247_s13, %s1782_s13   ;;  %s1163_s12 = sphi %s1245_s12, %s1776_s12  }
  0x10   : > { %1720 = sst [smem:[#allocation14_spill]] %s1175_s15  ;;  %p1312_p0 = scmp.ge.s32.totalorder %s34_s25, 4 }
  0x11   : > { %1721 = sst [smem:[#allocation15_spill]] %s1179_s16  ;;  %p1694_p1 = scmp.eq.s32.totalorder %s1211_s24, 0 }
  0x12   : > { %1722 = sst [smem:[#allocation16_spill]] %s1187_s18  ;;  %p85_p2 = scmp.ne.s32.totalorder %s1171_s14, %s1167_s13 }
  0x13   : > { %1723 = sst [smem:[#allocation17_spill]] %s1191_s19  ;;  %s1793_s25 = smov (%p1312_p0, %s34_s25), 0 }
  0x14   : > { %1724 = sst [smem:[#allocation18_spill]] %s1195_s20  ;;  %p1326_p3 = por %p85_p2, %p1694_p1 }
  0x15   : > { %1726 = sst [smem:[#allocation19_spill]] %s1793_s25  ;;  %p1693_p5 = scmp.lt.s32.totalorder %s1211_s24, 16 }
  0x16   : > { %s194_s4 = sand.u32 1, %s1211_s24   ;;  %s196_s5 = sand.u32 1, %s1171_s14  }
  0x17   : > { %s1337_s6 = sshll.u32 %s196_s5, 6  ;;  %s1692_s7 = sshll.u32 %s1207_s23, 6 }
  0x18   : > { %s203_s8 = sadd.s32 %s1199_s21, %s1692_s7  ;;  %s198_s10 = scalar_lea.vmem [#allocation6], %s1337_s6 }
  0x19   : > { %s729_s9 = sshll.u32 %s203_s8, 6  ;;  %s206_s11 = sshll.u32 %s198_s10, 4  ;;  %s1349_s11 = int_to_ptr.vmem [resolvable:$true] %s206_s11 }
  0x1a   : > { %s1728_s1 = sld [smem:[#allocation27_spill]]  ;;  %p1355_p6 = pnand %p1693_p5, %p1326_p3 }
  0x1b   : > { %s1361_s8 = scalar_lea.sflag [#allocation7], %s194_s4 }
  0x1c   : > { %p1699_p10 = pneg %p1355_p6 }
  0x20   : > { %s1347_s3 = scalar_lea.hbm %s1728_s1, %s729_s9  ;;  %s984_s9 = scalar_lea.hbm %s1728_s1, 8192 }
  0x21   : > { %s979_s26 = scalar_lea.hbm %s1347_s3, 1024  ;;  %p985_p13 = scmp.lt.u32.totalorder %s1347_s3, %s1728_s1 }
  0x22   : > { %p980_p9 = scmp.ne.s32.totalorder %s1347_s3, %s979_s26  ;;  %p986_p2 = scmp.lt.u32.totalorder %s984_s9, %s979_s26 }
  0x23   : > { %p988_p5 = scmp.lt.u32.totalorder %s979_s26, %s1347_s3 }
  0x24   : > { %p982_p11 = pnand %p1699_p10, %p980_p9  ;;  %p987_p3 = por %p986_p2, %p985_p13 }
  0x26   : > { %p983_p12 = pneg %p982_p11  ;;  %p989_p4 = por %p988_p5, %p987_p3 }
  0x28   : > { %p990_p1 = pnand %p989_p4, %p983_p12 }
  0x2a   : > { %993 = shalt.err (!%p990_p1)
}
  0x2b   : > { %s994_s4 = scalar_lea.vmem %s1349_s11, 1024  ;;  %s1213_s28 = smov [#allocation6]  }
  0x2c   : > { %p995_p9 = scmp.ne.s32.totalorder %s1349_s11, %s994_s4  ;;  %s999_s29 = sshll.u32 %s1213_s28, 4  ;;  %s1000_s29 = int_to_ptr.vmem [resolvable:$false] %s999_s29 }
  0x2d   : > { %s1001_s7 = scalar_lea.vmem %s1000_s29, 2048  ;;  %p1002_p8 = scmp.lt.s32.totalorder %s1349_s11, %s1000_s29 }
  0x2e   : > { %p997_p11 = pnand %p995_p9, %p1699_p10  ;;  %p1003_p13 = scmp.lt.s32.totalorder %s1001_s7, %s994_s4 }
  0x30   : > { %p998_p7 = pneg %p997_p11  ;;  %p1004_p2 = por %p1003_p13, %p1002_p8 }
  0x32   : > { %p1005_p5 = pnand %p1004_p2, %p998_p7 }
  0x34   : > { %1008 = shalt.err (!%p1005_p5)
}
  0x35   : > { %s1214_s26 = smov 256   ;;  %s1695_s9 = smov 64  }
  0x36   : > { %s1697_s10 = smov 4   ;;  %p1730_p1 = scmp.lt.s32.totalorder %s1211_s24, 17 }
  0x37   : > { %836 = dma.hbm_to_vmem [thread:$0]  (!%p1355_p6), %s1347_s3, 1024, %s1349_s11, %s1361_s8, %s1214_s26, %s1695_s9, %s1697_s10  }
  0x38   : > { %p1731_p4 = scmp.ge.s32.totalorder %s1211_s24, 1  ;;  %s1400_s28 = sadd.s32 4294967295, %s1211_s24  }
  0x39   : > { %1733 = sst [smem:[#allocation20_spill]] %s1400_s28  ;;  %s720_s29 = sadd.s32 4294967294, %s1211_s24  }
  0x3a   : > { %p1395_p7 = pnand %p1731_p4, %p1730_p1  ;;  %s37_s7 = sadd.s32 1, %s1203_s22 }
  0x3b   : > { %s50_s30 = sadd.s32 1, %s1183_s17  ;;  %s1795_s7 = smov (!%p1312_p0, %s37_s7), %s1203_s22 }
  0x3c   : > { %s1732_s4 = scalar_select %p1395_p7, 1, 0 }
  0x3d   : > { %p57_p8 = scmp.ne.s32.totalorder %s1183_s17, %s1179_s16  ;;  %p63_p12 = scmp.ne.s32.totalorder %s1179_s16, %s1175_s15 }
  0x3e   : > { %p39_p3 = scmp.ge.s32.totalorder %s1795_s7, 2  ;;  %p64_p9 = scmp.eq.s32.totalorder %s1400_s28, 0 }
  0x3f   : > { %p1734_p11 = scmp.eq.s32.totalorder %s1211_s24, 0  ;;  %p145_p2 = scmp.eq.s32.totalorder %s1400_s28, 15 }
  0x40   : > { %s1797_s7 = smov (%p39_p3, %s1795_s7), 0  ;;  %s1737_s27 = sadd.s32 1, %s1207_s23 }
  0x41   : > { %p1415_p13 = por %p1734_p11, %p57_p8  ;;  %1736 = sst [smem:[#allocation21_spill]] %s1797_s7 }
  0x42   : > { %s1799_s27 = smov (!%p39_p3, %s1737_s27), %s1207_s23  ;;  %s46_s11 = ssub.s32 %s1203_s22, %s1797_s7 }
  0x43   : > { %p1430_p0 = por %p64_p9, %p63_p12  ;;  %p43_p5 = scmp.ge.s32.totalorder %s1799_s27, 2 }
  0x44   : > { %p1740_p1 = scmp.ne.s32.totalorder %s1167_s13, %s1163_s12  ;;  %p1441_p11 = por %p145_p2, %p57_p8 }
  0x45   : > { %s1738_s26 = scalar_select %p1430_p0, 1, 0 }
  0x46   : > { %p1437_p4 = por %p1740_p1, %p64_p9  ;;  %p151_p3 = scmp.eq.s32.totalorder %s720_s29, 15 }
  0x47   : > { %1739 = sst [smem:[#allocation22_spill]] %s1738_s26  ;;  %s1801_s27 = smov (%p43_p5, %s1799_s27), 0 }
  0x48   : > { %s1741_s9 = scalar_select %p1437_p4, 1, 0 }
  0x49   : > { %s1743_s10 = scalar_select %p1441_p11, 1, 0 }
  0x4a   : > { %1742 = sst [smem:[#allocation23_spill]] %s1741_s9  ;;  %p1450_p10 = por %p151_p3, %p63_p12 }
  0x4b   : > { %1744 = sst [smem:[#allocation24_spill]] %s1743_s10  ;;  %s171_s7 = sand.u32 1, %s1183_s17  }
  0x4c   : > { %1745 = sst [smem:[#allocation25_spill]] %s1801_s27  ;;  %s45_s12 = ssub.s32 %s1207_s23, %s1801_s27 }
  0x4d   : > { %s1746_s1 = scalar_select %p1450_p10, 1, 0 }
  0x4e   : > { %s47_s20 = sor.u32 %s46_s11, %s45_s12  ;;  %s1748_s19 = ssub.s32 %s1199_s21, %s1793_s25 }
  0x4f   : > { %1747 = sst [smem:[#allocation26_spill]] %s1746_s1  ;;  %s75_s18 = sor.u32 %s1748_s19, %s45_s12 }
  0x50   : > { %p48_p8 = scmp.eq.s32.totalorder %s47_s20, 0  ;;  %p76_p9 = scmp.eq.s32.totalorder %s75_s18, 0 }
  0x51   : > { %s723_s29 = sshll.u32 %s171_s7, 3  ;;  %s724_s10 = sshll.u32 %s1203_s22, 1 }
  0x52   : > { %s1462_s9 = scalar_select %p48_p8, %s1183_s17, %s50_s30  }
  0x53   : > { %s1749_s15 = sadd.s32 1, %s1171_s14  ;;  %s725_s28 = sshll.u32 %s1207_s23, 2 }
  0x54   : > { %s1467_s13 = scalar_select %p76_p9, %s1171_s14, %s1749_s15  }
  0x55   : > { %s181_s1 = sadd.s32 %s725_s28, %s724_s10  ;;  %s175_s26 = scalar_lea.vmem [#allocation3], %s723_s29 }
  0x56   : > { %s184_s27 = sshll.u32 %s175_s26, 4  ;;  %s726_s16 = sshll.u32 %s181_s1, 6  ;;  %s1470_s27 = int_to_ptr.vmem [resolvable:$true] %s184_s27 }
  0x57   : > { %s1475_s19 = scalar_lea.hbm %s1687_s0, %s726_s16  ;;  %p1750_p12 = scmp.lt.s32.totalorder %s1211_s24, 16 }
  0x58   : > { %s731_s1 = sshll.u32 %s1199_s21, 4  ;;  %s1752_s18 = sshll.u32 %s1207_s23, 6 }
  0x59   : > { %p1481_p2 = pnand %p1750_p12, %p1415_p13  ;;  %s1488_s20 = sadd.s32 %s731_s1, %s1752_s18 }
  0x5a   : > { %s1490_s30 = scalar_lea.sflag [#allocation4], %s171_s7  ;;  %s1009_s16 = scalar_lea.hbm %s1475_s19, 128 }
  0x5b   : > { %p1010_p5 = scmp.ne.s32.totalorder %s1475_s19, %s1009_s16  ;;  %p1011_p1 = pneg %p1481_p2 }
  0x5c   : > { %s1014_s28 = scalar_lea.hbm %s1687_s0, 512  ;;  %p1015_p13 = scmp.lt.u32.totalorder %s1475_s19, %s1687_s0 }
  0x5d   : > { %p1012_p3 = pnand %p1011_p1, %p1010_p5  ;;  %p1016_p9 = scmp.lt.u32.totalorder %s1014_s28, %s1009_s16 }
  0x5e   : > { %p1018_p10 = scmp.lt.u32.totalorder %s1009_s16, %s1475_s19 }
  0x5f   : > { %p1013_p8 = pneg %p1012_p3  ;;  %p1017_p12 = por %p1016_p9, %p1015_p13 }
  0x61   : > { %p1019_p11 = por %p1018_p10, %p1017_p12 }
  0x63   : > { %p1020_p4 = pnand %p1019_p11, %p1013_p8 }
  0x65   : > { %1023 = shalt.err (!%p1020_p4)
}
  0x66   : > { %s1024_s7 = scalar_lea.vmem %s1470_s27, 128  ;;  %s1217_s12 = smov [#allocation3]  }
  0x67   : > { %p1025_p5 = scmp.ne.s32.totalorder %s1470_s27, %s1024_s7  ;;  %s1029_s29 = sshll.u32 %s1217_s12, 4  ;;  %s1030_s29 = int_to_ptr.vmem [resolvable:$false] %s1029_s29 }
  0x68   : > { %s1031_s11 = scalar_lea.vmem %s1030_s29, 256  ;;  %p1032_p7 = scmp.lt.s32.totalorder %s1470_s27, %s1030_s29 }
  0x69   : > { %p1027_p3 = pnand %p1025_p5, %p1011_p1  ;;  %p1033_p13 = scmp.lt.s32.totalorder %s1031_s11, %s1024_s7 }
  0x6b   : > { %p1028_p0 = pneg %p1027_p3  ;;  %p1034_p9 = por %p1033_p13, %p1032_p7 }
  0x6d   : > { %p1035_p10 = pnand %p1034_p9, %p1028_p0 }
  0x6f   : > { %1038 = shalt.err (!%p1035_p10)
}
  0x70   : > { %s1753_s1 = smov 4   ;;  %s1754_s18 = smov 64  }
  0x71   : > { %833 = dma.hbm_to_vmem [thread:$0]  (!%p1481_p2), %s1475_s19, 128, %s1470_s27, %s1490_s30, %s1754_s18, %s1754_s18, %s1753_s1  }
  0x72   : > { %s733_s16 = sshll.u32 %s1488_s20, 6  ;;  %s220_s25 = scalar_lea.vmem [#allocation8], %s1337_s6 }
  0x73   : > { %s229_s10 = sshll.u32 %s220_s25, 4  ;;  %s1526_s26 = scalar_lea.hbm %s1689_s2, %s733_s16  ;;  %s1528_s10 = int_to_ptr.vmem [resolvable:$true] %s229_s10 }
  0x74   : > { %s1039_s15 = scalar_lea.hbm %s1526_s26, 1024  ;;  %p1755_p0 = pneg %p1355_p6 }
  0x75   : > { %p1040_p7 = scmp.ne.s32.totalorder %s1526_s26, %s1039_s15  ;;  %s1044_s19 = scalar_lea.hbm %s1689_s2, 8192 }
  0x76   : > { %p1045_p2 = scmp.lt.u32.totalorder %s1526_s26, %s1689_s2  ;;  %p1046_p1 = scmp.lt.u32.totalorder %s1044_s19, %s1039_s15 }
  0x77   : > { %p1042_p4 = pnand %p1040_p7, %p1755_p0  ;;  %p1048_p12 = scmp.lt.u32.totalorder %s1039_s15, %s1526_s26 }
  0x78   : > { %p1047_p8 = por %p1046_p1, %p1045_p2 }
  0x79   : > { %p1043_p11 = pneg %p1042_p4 }
  0x7a   : > { %p1049_p5 = por %p1048_p12, %p1047_p8 }
  0x7c   : > { %p1050_p3 = pnand %p1049_p5, %p1043_p11 }
  0x7e   : > { %1053 = shalt.err (!%p1050_p3)
}
  0x7f   : > { %s1054_s7 = scalar_lea.vmem %s1528_s10, 1024  ;;  %p1756_p9 = pmov %p1755_p0 }
  0x80   : > { %p1055_p13 = scmp.ne.s32.totalorder %s1528_s10, %s1054_s7  ;;  %s1218_s12 = smov [#allocation8]  }
  0x81   : > { %s1059_s29 = sshll.u32 %s1218_s12, 4  ;;  %s1060_s29 = int_to_ptr.vmem [resolvable:$false] %s1059_s29 }
  0x82   : > { %p1057_p10 = pnand %p1055_p13, %p1756_p9  ;;  %s1061_s11 = scalar_lea.vmem %s1060_s29, 2048 }
  0x83   : > { %p1062_p0 = scmp.lt.s32.totalorder %s1528_s10, %s1060_s29  ;;  %p1063_p4 = scmp.lt.s32.totalorder %s1061_s11, %s1054_s7 }
  0x84   : > { %p1058_p7 = pneg %p1057_p10 }
  0x85   : > { %p1064_p2 = por %p1063_p4, %p1062_p0 }
  0x87   : > { %p1065_p1 = pnand %p1064_p2, %p1058_p7 }
  0x89   : > { %1068 = shalt.err (!%p1065_p1)
}
  0x8a   : > { %839 = dma.hbm_to_vmem [thread:$0]  (!%p1355_p6), %s1526_s26, 1024, %s1528_s10, %s1361_s8, %s1754_s18, %s1754_s18, %s1753_s1  }
  0x8b   : > { %p1757_p11 = scmp.ne.s32.totalorder %s1732_s4, 0 }
  0x8c   : > { %s1758_s16 = sld [smem:[#allocation15_spill]] (!%p1757_p11)  ;;  %s1759_s25 = sld [smem:[#allocation22_spill]] (!%p1757_p11) }
  0x8d   : > { %241 = sbr.rel (%p1757_p11) target bundleno = 707 (0x2c3), region = 32 }
  0x92   : > { %s1560_s28 = sand.u32 (!%p1757_p11), 1, %s1758_s16   ;;  %p1760_p8 = scmp.ne.s32.totalorder (!%p1757_p11), %s1759_s25, 0 }
  0x93   : > { %s735_s3 = sshll.u32 (!%p1757_p11), %s1560_s28, 3  ;;  %s244_s15 = scalar_lea.sflag (!%p1757_p11), [#allocation4], %s1560_s28 }
  0x94   : > { %s1564_s27 = scalar_lea.vmem [#allocation3], %s735_s3 }
  0x95   : > { %1150 = dma.done.wait (%p1760_p8), %s244_s15, 128  }
  0x96   : > { %1152 = vsyncadd (%p1760_p8), %s244_s15, 4294967168  ;;  %s1761_s5 = sld [smem:[#allocation20_spill]]  ;;  %s1762_s8 = sld [smem:[#allocation13_spill]] }
  0x97   : > { %s1763_s1 = sld [smem:[#allocation23_spill]] }
  0x9c   : > { %s252_s4 = sand.u32 1, %s1761_s5   ;;  %s254_s18 = sand.u32 1, %s1762_s8  }
  0x9d   : > { %s736_s10 = sshll.u32 %s254_s18, 6  ;;  %s253_s26 = scalar_lea.sflag [#allocation7], %s252_s4 }
  0x9e   : > { %s1572_s6 = scalar_lea.vmem [#allocation6], %s736_s10  ;;  %p1764_p6 = scmp.ne.s32.totalorder %s1763_s1, 0 }
  0xa0   : > { %1154 = dma.done.wait (%p1764_p6), %s253_s26, 2048  }
  0xa1   : > { %1156 = vsyncadd (%p1764_p6), %s253_s26, 4294965248  ;;  %s738_s19 = sshll.u32 %s1560_s28, 4  ;;  %s1579_s20 = scalar_lea.vmem [#allocation8], %s736_s10 }
  0xa2   : > { %s1581_s30 = scalar_lea.vmem [#allocation9], %s738_s19  ;;  %s1765_s7 = sld [smem:[#allocation16_spill]] }
  0xa8   : > { %p739_p12 = scmp.ne.s32.totalorder %s1765_s7, 0 }
  0xa9   : > { %v1219_v0 = vmov (!%p739_p12), 0.0  }
  0xaa   : > { %305 = sbr.rel (%p739_p12) target bundleno = 177 (0xb1), region = 48  ;;  %306 = vst [vmem:[#allocation2] sm:$0xff] (!%p739_p12), %v1219_v0  ;;  %307 = vst [vmem:[#allocation2 + $0x8] sm:$0xff] (!%p739_p12), %v1219_v0 }
  0xb1 PF: > { %v958_v1 = vld [vmem:[%s1572_s6] sm:$0xff]   ;;  %v1220_v2 = vmov 0.0   ;;  %v959_v3 = vld [vmem:[%s1572_s6 + $0x8] sm:$0xff]   ;;  %vm1221_vm0 = vmmov 0   ;;  %v960_v4 = vld [vmem:[%s1572_s6 + $0x10] sm:$0xff]   ;;  %s1766_s12 = sld [smem:[#allocation16_spill]] }
  0xb2   : > { %782 = vmatprep.subr.bf16.mxu0 %v1220_v2  ;;  %802 = vmatprep.subr.bf16.mxu1 %v1220_v2  ;;  %v961_v5 = vld [vmem:[%s1572_s6 + $0x18] sm:$0xff]   ;;  %v962_v6 = vld [vmem:[%s1572_s6 + $0x20] sm:$0xff]   ;;  %v963_v7 = vld [vmem:[%s1572_s6 + $0x28] sm:$0xff]  }
  0xb3   : > { %783 = vmatpush3.bf16.msra.mxu0 %v958_v1  ;;  %798 = vmatprep.mubr.msk.bf16.mxu0 %vm1221_vm0, %v1220_v2  ;;  %v964_v8 = vld [vmem:[%s1572_s6 + $0x30] sm:$0xff]   ;;  %v965_v9 = vld [vmem:[%s1572_s6 + $0x38] sm:$0xff]   ;;  %v967_v11 = vld [vmem:[%s1579_s20] sm:$0xff]  }
  0xb4   : > { %784 = vmatprep.subr.bf16.mxu0 %v1220_v2  ;;  %818 = vmatprep.mubr.msk.bf16.mxu1 %vm1221_vm0, %v1220_v2  ;;  %v966_v10 = vld [vmem:[%s1564_s27] sm:$0xff]   ;;  %v968_v12 = vld [vmem:[%s1579_s20 + $0x8] sm:$0xff]   ;;  %v971_v15 = vld [vmem:[%s1579_s20 + $0x20] sm:$0xff]  }
  0xb5   : > { %803 = vmatpush3.bf16.msra.mxu1 %v967_v11  ;;  %v969_v13 = vld [vmem:[%s1579_s20 + $0x10] sm:$0xff]   ;;  %v970_v14 = vld [vmem:[%s1579_s20 + $0x18] sm:$0xff]   ;;  %v972_v16 = vld [vmem:[%s1579_s20 + $0x28] sm:$0xff]  }
  0xb6   : > { %804 = vmatprep.subr.bf16.mxu1 %v1220_v2  ;;  %v973_v17 = vld [vmem:[%s1579_s20 + $0x30] sm:$0xff]   ;;  %v974_v18 = vld [vmem:[%s1579_s20 + $0x38] sm:$0xff]   ;;  %v439_v42 = vld [vmem:[#allocation2] sm:$0xff] }
  0xb7   : > { %785 = vmatpush3.bf16.msra.mxu0 %v959_v3  ;;  %v440_v44 = vld [vmem:[#allocation2 + $0x8] sm:$0xff]  ;;  %p757_p5 = scmp.ne.s32.totalorder %s1766_s12, 3 }
  0xb8   : > { %786 = vmatprep.subr.bf16.mxu0 %v1220_v2 }
  0xb9   : > { %805 = vmatpush3.bf16.msra.mxu1 %v968_v12 }
  0xba   : > { %806 = vmatprep.subr.bf16.mxu1 %v1220_v2 }
  0xbb   : > { %787 = vmatpush3.bf16.msra.mxu0 %v960_v4 }
  0xbc   : > { %788 = vmatprep.subr.bf16.mxu0 %v1220_v2 }
  0xbd   : > { %807 = vmatpush3.bf16.msra.mxu1 %v969_v13 }
  0xbe   : > { %808 = vmatprep.subr.bf16.mxu1 %v1220_v2 }
  0xbf   : > { %789 = vmatpush3.bf16.msra.mxu0 %v961_v5 }
  0xc0   : > { %790 = vmatprep.subr.bf16.mxu0 %v1220_v2 }
  0xc1   : > { %809 = vmatpush3.bf16.msra.mxu1 %v970_v14 }
  0xc2   : > { %810 = vmatprep.subr.bf16.mxu1 %v1220_v2 }
  0xc3   : > { %791 = vmatpush3.bf16.msra.mxu0 %v962_v6 }
  0xc4   : > { %792 = vmatprep.subr.bf16.mxu0 %v1220_v2 }
  0xc5   : > { %811 = vmatpush3.bf16.msra.mxu1 %v971_v15 }
  0xc6   : > { %812 = vmatprep.subr.bf16.mxu1 %v1220_v2 }
  0xc7   : > { %793 = vmatpush3.bf16.msra.mxu0 %v963_v7 }
  0xc8   : > { %794 = vmatprep.subr.bf16.mxu0 %v1220_v2 }
  0xc9   : > { %813 = vmatpush3.bf16.msra.mxu1 %v972_v16 }
  0xca   : > { %814 = vmatprep.subr.bf16.mxu1 %v1220_v2 }
  0xcb   : > { %795 = vmatpush3.bf16.msra.mxu0 %v964_v8 }
  0xcc   : > { %796 = vmatprep.subr.bf16.mxu0 %v1220_v2 }
  0xcd   : > { %815 = vmatpush3.bf16.msra.mxu1 %v973_v17 }
  0xce   : > { %816 = vmatprep.subr.bf16.mxu1 %v1220_v2 }
  0xcf   : > { %797 = vmatpush3.bf16.msra.mxu0 %v965_v9 }
  0xd1   : > { %817 = vmatpush3.bf16.msra.mxu1 %v974_v18 }
  0xd2   : > { %799 = vmatmul.mubr.bf16.vlgmr.msra.gmra.mrb[0].mxu0 %v966_v10 }
 0x1a5   : > { %v414_v19 = vpop.f32.mrb[0].mxu0 }
 0x1a6   : > { %v421_v20 = vmul.f32 %v414_v19, %v414_v19  ;;  %v800_v21 = vpop.f32.mrb[1].mxu0 }
 0x1a7   : > { %v417_v22 = vpop.f32.mrb[2].mxu0 }
 0x1a8   : > { %v423_v23 = vmul.f32 %v421_v20, %v414_v19  ;;  %v422_v24 = vmul.f32 %v417_v22, %v417_v22  ;;  %v801_v25 = vpop.f32.mrb[3].mxu0 }
 0x1aa   : > { %v425_v26 = vmul.f32 0.044715, %v423_v23  ;;  %v424_v27 = vmul.f32 %v422_v24, %v417_v22 }
 0x1ac   : > { %v427_v28 = vadd.f32 %v425_v26, %v414_v19  ;;  %v426_v29 = vmul.f32 0.044715, %v424_v27 }
 0x1ae   : > { %v429_v30 = vmul.f32 0.7978846, %v427_v28  ;;  %v428_v31 = vadd.f32 %v426_v29, %v417_v22 }
 0x1b0   : > { %975 = vtanh.f32 %v429_v30  ;;  %v430_v32 = vmul.f32 0.7978846, %v428_v31 }
 0x1b2   : > { %977 = vtanh.f32 %v430_v32 }
 0x1ba   : > { %v976_v33 = vpop.eup %975 }
 0x1bb   : > { %v433_v34 = vadd.f32 1.0, %v976_v33 }
 0x1bc   : > { %v978_v35 = vpop.eup %977 }
 0x1bd   : > { %v435_v36 = vmul.f32 0.5, %v433_v34  ;;  %v434_v37 = vadd.f32 1.0, %v978_v35 }
 0x1bf   : > { %v436_v38 = vmul.f32 0.5, %v434_v37  ;;  %v437_v39 = vmul.f32 %v435_v36, %v414_v19 }
 0x1c1   : > { %v438_v40 = vmul.f32 %v436_v38, %v417_v22 }
 0x1c3   : > { %v441_v41 = vpack.c.bf16 %v438_v40, %v437_v39 }
 0x1c5   : > { %819 = vmatmul.mubr.bf16.vlgmr.msra.gmra.mrb[0].mxu1 %v441_v41 }
 0x297   : > { %554 = sbr.rel (%p757_p5) target bundleno = 678 (0x2a6), region = 52 }
 0x298   : > { %v540_v43 = vpop.f32.mrb[0].mxu1 }
 0x299   : > { %v547_v45 = vadd.f32 %v540_v43, %v439_v42  ;;  %v820_v46 = vpop.f32.mrb[1].mxu1 }
 0x29a   : > { %v543_v47 = vpop.f32.mrb[2].mxu1 }
 0x29b   : > { %549 = vst [vmem:[#allocation2] sm:$0xff] %v547_v45  ;;  %v548_v48 = vadd.f32 %v543_v47, %v440_v44  ;;  %v821_v49 = vpop.f32.mrb[3].mxu1 }
 0x29d   : > { %550 = vst [vmem:[#allocation2 + $0x8] sm:$0xff] %v548_v48 }
 0x2a2   : > { %v555_v50 = vld [vmem:[#allocation2] sm:$0xff] }
 0x2a3   : > { %557 = vst [vmem:[%s1581_s30] sm:$0xff] %v555_v50 }
 0x2a4   : > { %v556_v51 = vld [vmem:[#allocation2 + $0x8] sm:$0xff] }
 0x2a5   : > { %558 = vst [vmem:[%s1581_s30 + $0x8] sm:$0xff] %v556_v51 }
 0x2a6 PF: > { %s1767_s29 = sld [smem:[#allocation17_spill]]  ;;  %s1768_s11 = sld [smem:[#allocation18_spill]] }
 0x2a7   : > { %s1769_s16 = sld [smem:[#allocation24_spill]]  ;;  %s575_s15 = sshll.u32 %s1581_s30, 4  ;;  %s1607_s15 = int_to_ptr.vmem [resolvable:$true] %s575_s15 }
 0x2a8   : > { %s1770_s4 = sld [smem:[#allocation28_spill]]  ;;  %s560_s10 = scalar_lea.sflag [#allocation5], %s1560_s28 }
 0x2a9   : > { %s1069_s26 = scalar_lea.vmem %s1607_s15, 256  ;;  %s1222_s6 = smov [#allocation9]  }
 0x2aa   : > { %p1070_p3 = scmp.ne.s32.totalorder %s1607_s15, %s1069_s26  ;;  %s1073_s19 = sshll.u32 %s1222_s6, 4  ;;  %s1074_s19 = int_to_ptr.vmem [resolvable:$false] %s1073_s19 }
 0x2ab   : > { %s1075_s20 = scalar_lea.vmem %s1074_s19, 512  ;;  %p1076_p7 = scmp.lt.s32.totalorder %s1607_s15, %s1074_s19 }
 0x2ac   : > { %s759_s25 = sshll.u32 %s1767_s29, 1  ;;  %s760_s3 = sshll.u32 %s1768_s11, 2 }
 0x2ad   : > { %s572_s27 = sadd.s32 %s760_s3, %s759_s25  ;;  %p1771_p13 = scmp.ne.s32.totalorder %s1769_s16, 0 }
 0x2ae   : > { %s761_s5 = sshll.u32 %s572_s27, 7  ;;  %p1077_p0 = scmp.lt.s32.totalorder %s1075_s20, %s1069_s26 }
 0x2af   : > { %s1612_s18 = scalar_lea.hbm %s1770_s4, %s761_s5  ;;  %p1071_p9 = pnand %p1070_p3, %p1771_p13 }
 0x2b0   : > { %p1078_p4 = por %p1077_p0, %p1076_p7 }
 0x2b1   : > { %p1072_p10 = pneg %p1071_p9 }
 0x2b3   : > { %p1079_p2 = pnand %p1078_p4, %p1072_p10 }
 0x2b5   : > { %1082 = shalt.err (!%p1079_p2)
}
 0x2b6   : > { %s1083_s30 = scalar_lea.hbm %s1612_s18, 256  ;;  %s1087_s29 = scalar_lea.hbm %s1770_s4, 1024 }
 0x2b7   : > { %p1084_p1 = scmp.ne.s32.totalorder %s1612_s18, %s1083_s30  ;;  %p1088_p6 = scmp.lt.u32.totalorder %s1612_s18, %s1770_s4 }
 0x2b8   : > { %p1089_p12 = scmp.lt.u32.totalorder %s1087_s29, %s1083_s30  ;;  %p1091_p3 = scmp.lt.u32.totalorder %s1083_s30, %s1612_s18 }
 0x2b9   : > { %p1085_p11 = pnand %p1084_p1, %p1771_p13 }
 0x2ba   : > { %p1090_p5 = por %p1089_p12, %p1088_p6 }
 0x2bb   : > { %p1086_p8 = pneg %p1085_p11 }
 0x2bc   : > { %p1092_p9 = por %p1091_p3, %p1090_p5 }
 0x2be   : > { %p1093_p10 = pnand %p1092_p9, %p1086_p8 }
 0x2c0   : > { %1096 = shalt.err (!%p1093_p10)
}
 0x2c1   : > { %s1223_s3 = smov 128   ;;  %s1224_s27 = smov 8  }
 0x2c2   : > { %828 = dma.vmem_to_hbm [thread:$0]  (%p1771_p13), %s1607_s15, 256, %s1612_s18, %s560_s10, %s1223_s3, %s1223_s3, %s1224_s27  }
 0x2c3 PF: > { %s1772_s5 = sld [smem:[#allocation14_spill]]  ;;  %p845_p7 = scmp.ge.s32.totalorder %s1211_s24, 2 }
 0x2c4   : > { %s1773_s8 = sld [smem:[#allocation26_spill]] }
 0x2c9   : > { %s590_s1 = sand.u32 1, %s1772_s5  }
 0x2ca   : > { %p1774_p0 = scmp.ne.s32.totalorder %s1773_s8, 0  ;;  %s591_s26 = scalar_lea.sflag [#allocation5], %s590_s1 }
 0x2cc   : > { %p841_p4 = pnand %p845_p7, %p1774_p0 }
 0x2ce   : > { %1158 = dma.done.wait (!%p841_p4), %s591_s26, 256  }
 0x2cf   : > { %1160 = vsyncadd (!%p841_p4), %s591_s26, 4294967040  ;;  %s22_s24 = sadd.s32 1, %s1211_s24   ;;  %s1776_s12 = sld [smem:[#allocation13_spill]] }
 0x2d0   : > { %p1643_p2 = scmp.ge.s32.totalorder %s22_s24, 18   ;;  %s1777_s28 = smov %s1467_s13 }
 0x2d1   : > { %s1778_s15 = sld [smem:[#allocation15_spill]]  ;;  %s1779_s10 = sld [smem:[#allocation19_spill]] }
 0x2d2   : > { %s1780_s30 = sld [smem:[#allocation21_spill]]  ;;  %s1781_s7 = sld [smem:[#allocation25_spill]] }
 0x2d3   : > { %s1782_s13 = smov %s1171_s14  ;;  %s1783_s14 = smov %s1777_s28 }
 0x2d4   : > { %s1784_s16 = smov %s1183_s17  ;;  %s1785_s17 = smov %s1462_s9 }
 0x2d5   : > { %s1786_s18 = smov %s1199_s21  ;;  %s1787_s19 = smov %s1203_s22 }
 0x2d6   : > { %s1788_s20 = smov %s1207_s23  ;;  %21 = sbr.rel (!%p1643_p2) target bundleno = 15 (0xf), region = 109 }
 0x2d7   : > { %s1789_s21 = smov %s1779_s10 }
 0x2d8   : > { %s1790_s22 = smov %s1780_s30  ;;  %s1791_s23 = smov %s1781_s7 }
 0x2dd   :  { %596 = vsyncpa [#allocation4], 1 }
 0x2de   :  { %598 = vsyncpa [#allocation4 + $0x1], 1 }
 0x2df   :  { %599 = vsyncpa [#allocation7], 1 }
 0x2e0   :  { %601 = vsyncpa [#allocation7 + $0x1], 1 }
 0x2e1   :  { %602 = vsyncpa [#allocation5], 1 }
 0x2e2   :  { %604 = vsyncpa [#allocation5 + $0x1], 1 }

</bundles_post_ra>
